<compile_context>
chip_gen: v7x
topology: tpu7x:2x2x1
jax: 0.10.0
libtpu: 0.0.40
codegen_flags: <defaults>
</compile_context>

<pallas_src>
import functools

import jax
import jax.numpy as jnp
from jax.experimental import pallas as pl
from jax.experimental.pallas import tpu as pltpu

TEMPERATURE = 0.07
BASE_TEMPERATURE = 0.07
CONTRA_LAMBDA = 0.5


def _round_up(x, m):
    return (x + m - 1) // m * m


def _vmem_budget_bytes():
    """Per-generation scoped-VMEM budget: capacity minus ~24 MiB headroom."""
    try:
        cap = int(pltpu.get_tpu_info().vmem_capacity_bytes)
    except Exception:
        cap = 64 << 20          # v7x-safe default if the query is unavailable
    return max(cap - (24 << 20), 32 << 20)


def _pick_k1_tile(n_pad):
    """Kernel-1 row tile: as large as reasonable, but >= 2 blocks (megacore)."""
    for cand in (512, 256, 128, 64, 32, 16):
        if n_pad % cand == 0 and n_pad // cand >= 2:
            return cand
    return n_pad


# ---------------------------------------------------------------------------
# Kernel 1: MLP head (H -> 2H -> H) + L2 normalize, tiled over rows.
# ---------------------------------------------------------------------------
def _mlp_normalize_kernel(x_ref, w1_ref, b1_ref, w2_ref, b2_ref, z_ref):
    cdt = x_ref.dtype                         # compute dtype (f32 or bf16)
    # MXU matmuls with f32 accumulation; biases always f32.
    h = jnp.dot(x_ref[...], w1_ref[...],
                preferred_element_type=jnp.float32) + b1_ref[...]
    z = jnp.dot(h.astype(cdt), w2_ref[...],
                preferred_element_type=jnp.float32) + b2_ref[...]
    # z / sqrt(sum z^2) via EUP rsqrt; tiny clamp only guards exactly-zero
    # padded/degenerate rows (torch would NaN there anyway).
    ss = jnp.sum(z * z, axis=-1, keepdims=True)
    z_ref[...] = (z * jax.lax.rsqrt(jnp.maximum(ss, 1e-30))).astype(z_ref.dtype)


# ---------------------------------------------------------------------------
# Kernel 2: per-row SupCon statistics, tiled (row_tile, col_tile).
# ---------------------------------------------------------------------------
def _supcon_rows_kernel(zr_ref, zc_ref, gr_ref, gc_ref, out_ref,
                        denom_acc, possum_acc, *,
                        row_tile, col_tile, n_valid, n_pad, s_views,
                        inv_temp, zc_resident):
    j = pl.program_id(1)

    @pl.when(j == 0)
    def _init():
        denom_acc[...] = jnp.zeros_like(denom_acc)
        possum_acc[...] = jnp.zeros_like(possum_acc)

    if zc_resident:
        # Whole contrast matrix lives in VMEM (constant index_map -> DMA'd
        # once); slice the current column tile in-kernel.
        col0 = pl.multiple_of(j * col_tile, col_tile)
        zc = zc_ref[pl.ds(col0, col_tile), :]
    else:
        zc = zc_ref[...]

    # Similarity tile: contract the hidden axis of both operands directly
    # (no explicit .T / XLU transpose before the MXU).
    sim = jax.lax.dot_general(
        zr_ref[...], zc,
        dimension_numbers=(((1,), (1,)), ((), ())),
        preferred_element_type=jnp.float32) * inv_temp
    # Rows are L2-normalized, so the per-row max of sim is its diagonal (1/T);
    # subtract the constant instead of computing a row max (cancels exactly).
    logits = sim - inv_temp

    row0 = pl.program_id(0) * row_tile
    col_base = j * col_tile
    ridx = jax.lax.broadcasted_iota(jnp.int32, (row_tile, 1), 0) + row0
    cidx = jax.lax.broadcasted_iota(jnp.int32, (1, col_tile), 1) + col_base

    not_self = ridx != cidx                         # broadcast -> (row, col)
    if n_pad != n_valid:                            # trace-time specialization
        valid = jnp.logical_and(not_self, cidx < n_valid)
    else:
        valid = not_self
    # Positives: same group id (same sample, different view).
    pos = jnp.logical_and(valid, gr_ref[...] == gc_ref[...])

    # Select (not multiply) so padded/garbage columns never propagate NaN.
    masked_exp = jnp.where(valid, jnp.exp(logits), 0.0)
    masked_pos = jnp.where(pos, logits, 0.0)

    # Row sums on the MXU (dot against a ones column) instead of XLU
    # cross-lane reduces: the MXU has slack here, the XLU usually does not.
    ones_col = jnp.ones((col_tile, 1), dtype=jnp.float32)
    denom_acc[...] += jnp.dot(masked_exp, ones_col,
                              preferred_element_type=jnp.float32)
    possum_acc[...] += jnp.dot(masked_pos, ones_col,
                               preferred_element_type=jnp.float32)

    @pl.when(j == pl.num_programs(1) - 1)
    def _finalize():
        # Positives per row is structurally the constant S - 1.
        mlpp = (possum_acc[...] * (1.0 / float(s_views - 1))
                - jnp.log(denom_acc[...]))
        if n_pad != n_valid:
            mlpp = jnp.where(ridx < n_valid, mlpp, 0.0)
        out_ref[...] = mlpp


# ---------------------------------------------------------------------------
# Wrapper
# ---------------------------------------------------------------------------
def contra_target_forward(memory_bank, w1, b1, w2, b2,
                          temperature=TEMPERATURE,
                          base_temperature=BASE_TEMPERATURE,
                          contra_lambda=CONTRA_LAMBDA,
                          compute_dtype=jnp.float32):
    """memory_bank: [B, S, H]. Returns (loss_scalar, 0, 0).

    compute_dtype=jnp.bfloat16 feeds the bf16-native MXUs on v6e/v7x and
    halves the z HBM stream (validate at looser tolerance, ~1e-2)."""
    B, S, H = memory_bank.shape
    assert S >= 2, "SupCon needs at least 2 views (seq positions) per sample"
    N = B * S

    cdt = jnp.dtype(compute_dtype)
    isz = cdt.itemsize

    # Row-major flatten; positives become "same (index // S)".  The loss is
    # invariant to this consistent permutation of torch.cat(torch.unbind(f,1)).
    x = memory_bank.reshape(N, H).astype(cdt)

    # Kernel-2 tiling (row tile decoupled from col tile).  Granularity 16 so
    # both f32 and bf16 block layouts are legal; small problems keep >= 2 row
    # blocks so the 'parallel' axis can shard across v7x's two TensorCores.
    if N < 512:
        n_pad = _round_up(max(N, 32), 32)
        col_tile = n_pad
        row_tile = n_pad // 2
    else:
        col_tile = 256
        row_tile = 512 if N >= 2048 else 256
        n_pad = _round_up(N, row_tile)
    n_row_blocks = n_pad // row_tile
    n_col_blocks = n_pad // col_tile

    if n_pad != N:
        x = jnp.pad(x, ((0, n_pad - N), (0, 0)))

    w1c = w1.astype(cdt)
    w2c = w2.astype(cdt)
    b1f = b1.reshape(1, -1).astype(jnp.float32)
    b2f = b2.reshape(1, -1).astype(jnp.float32)

    budget = _vmem_budget_bytes()

    # ---- Kernel 1: MLP + normalize -> z [n_pad, H] ----
    k1_tile = _pick_k1_tile(n_pad)
    k1_blocks = n_pad // k1_tile
    # NOTE: the grid-invariant weight blocks are still default double-buffered;
    # at very large H (>=1024, f32) on v7x shrink k1_tile or use bf16 weights.
    vmem1 = (4 * k1_tile * H * isz                    # x in + z out (2 bufs ea.)
             + 2 * (H * 2 * H + 2 * H * H) * isz      # weights (2 bufs each)
             + 6 * (3 * H) * 4                        # biases
             + 6 * k1_tile * 2 * H * 4)               # f32 temporaries (h, z)
    vmem1 = int(min(max(vmem1 + (8 << 20), 16 << 20), budget))

    z = pl.pallas_call(
        _mlp_normalize_kernel,
        out_shape=jax.ShapeDtypeStruct((n_pad, H), cdt),
        grid_spec=pltpu.PrefetchScalarGridSpec(
            num_scalar_prefetch=0,
            grid=(k1_blocks,),
            in_specs=[
                pl.BlockSpec((k1_tile, H), lambda i: (i, 0)),
                pl.BlockSpec((H, 2 * H), lambda i: (0, 0)),
                pl.BlockSpec((1, 2 * H), lambda i: (0, 0)),
                pl.BlockSpec((2 * H, H), lambda i: (0, 0)),
                pl.BlockSpec((1, H), lambda i: (0, 0)),
            ],
            out_specs=pl.BlockSpec((k1_tile, H), lambda i: (i, 0)),
        ),
        compiler_params=pltpu.CompilerParams(
            dimension_semantics=("parallel",),
            vmem_limit_bytes=vmem1),
        cost_estimate=pl.CostEstimate(
            flops=int(8 * n_pad * H * H),
            transcendentals=int(n_pad),
            bytes_accessed=int(isz * (2 * n_pad * H + 4 * H * H) + 12 * H)),
    )(x, w1c, b1f, w2c, b2f)

    # Group id per row (sample index); padded rows get ids >= B so they never
    # match a valid row.
    gid = jnp.arange(n_pad, dtype=jnp.int32) // S
    gr = gid[:, None]
    gc = gid[None, :]

    # ---- Kernel 2: per-row SupCon statistics ----
    def k2_vmem(resident):
        zc_rows = n_pad if resident else col_tile
        b = 2 * row_tile * H * isz + 2 * zc_rows * H * isz     # zr + zc
        b += 8 * (row_tile + col_tile)                          # group ids
        b += 4 * row_tile * 4                                   # out + scratch
        b += 10 * row_tile * col_tile * 4                       # temporaries
        return b

    # Keep the full contrast matrix VMEM-resident when it fits the budget:
    # a single N*H read of z from HBM instead of one per row block.
    zc_resident = (n_col_blocks > 1
                   and k2_vmem(True) + (8 << 20) <= budget)
    if zc_resident:
        zc_spec = pl.BlockSpec((n_pad, H), lambda i, j: (0, 0))
    else:
        zc_spec = pl.BlockSpec((col_tile, H), lambda i, j: (j, 0))
    vmem2 = int(min(max(k2_vmem(zc_resident) + (8 << 20), 16 << 20), budget))

    kernel2 = functools.partial(
        _supcon_rows_kernel,
        row_tile=row_tile, col_tile=col_tile, n_valid=N, n_pad=n_pad,
        s_views=S, inv_temp=float(1.0 / temperature), zc_resident=zc_resident)

    mlpp = pl.pallas_call(
        kernel2,
        out_shape=jax.ShapeDtypeStruct((n_pad, 1), jnp.float32),
        grid_spec=pltpu.PrefetchScalarGridSpec(
            num_scalar_prefetch=0,
            grid=(n_row_blocks, n_col_blocks),
            in_specs=[
                pl.BlockSpec((row_tile, H), lambda i, j: (i, 0)),   # anchors
                zc_spec,                                            # contrast
                pl.BlockSpec((row_tile, 1), lambda i, j: (i, 0)),   # row gids
                pl.BlockSpec((1, col_tile), lambda i, j: (0, j)),   # col gids
            ],
            out_specs=pl.BlockSpec((row_tile, 1), lambda i, j: (i, 0)),
            scratch_shapes=[pltpu.VMEM((row_tile, 1), jnp.float32),  # denom
                            pltpu.VMEM((row_tile, 1), jnp.float32)], # pos sum
        ),
        compiler_params=pltpu.CompilerParams(
            dimension_semantics=("parallel", "arbitrary"),
            vmem_limit_bytes=vmem2),
        cost_estimate=pl.CostEstimate(
            flops=int(2 * n_pad * n_pad * (H + 2) + 8 * n_pad * n_pad),
            transcendentals=int(n_pad * n_pad),
            bytes_accessed=int(isz * n_pad * H *
                               (1 + (1 if zc_resident else n_row_blocks))
                               + 8 * n_pad)),
    )(z, z, gr, gc)

    # Tiny final reduction (N floats) + scale in plain JAX glue.
    loss = (-(temperature / base_temperature) * contra_lambda / N) * jnp.sum(mlpp)
    return loss, 0, 0


# ---------------------------------------------------------------------------
# Pure-JAX reference (faithful translation of the PyTorch module).
# ---------------------------------------------------------------------------
def _reference_forward(memory_bank, w1, b1, w2, b2):
    B, S, H = memory_bank.shape
    z = memory_bank @ w1 + b1
    z = z @ w2 + b2
    z = z / jnp.sqrt(jnp.sum(z ** 2, axis=-1, keepdims=True))
    feat = jnp.transpose(z, (1, 0, 2)).reshape(S * B, H)   # torch view ordering
    sim = feat @ feat.T / TEMPERATURE
    logits = sim - jnp.max(sim, axis=1, keepdims=True)
    n = S * B
    eye_n = jnp.eye(n, dtype=jnp.float32)
    logits_mask = 1.0 - eye_n
    pos_mask = jnp.tile(jnp.eye(B, dtype=jnp.float32), (S, S)) * logits_mask
    exp_logits = jnp.exp(logits) * logits_mask
    log_prob = logits - jnp.log(jnp.sum(exp_logits, axis=1, keepdims=True))
    mean_log_prob_pos = jnp.sum(pos_mask * log_prob, axis=1) / jnp.sum(pos_mask, axis=1)
    loss = -(TEMPERATURE / BASE_TEMPERATURE) * jnp.mean(mean_log_prob_pos)
    return loss * CONTRA_LAMBDA


if __name__ == "__main__":
    key = jax.random.PRNGKey(0)
    k_x, k_w1, k_b1, k_w2, k_b2, k_x2 = jax.random.split(key, 6)

    # Small shapes consistent with the module: memory_bank [B, S, H].
    B, S, H = 2, 8, 32
    memory_bank = jax.random.normal(k_x, (B, S, H), dtype=jnp.float32)

    # nn.Linear shapes (H->2H, 2H->H), stored [in, out] so kernels do x @ W + b.
    w1 = jax.random.normal(k_w1, (H, 2 * H), dtype=jnp.float32) * (1.0 / jnp.sqrt(H))
    b1 = jax.random.normal(k_b1, (2 * H,), dtype=jnp.float32) * 0.01
    w2 = jax.random.normal(k_w2, (2 * H, H), dtype=jnp.float32) * (1.0 / jnp.sqrt(2.0 * H))
    b2 = jax.random.normal(k_b2, (H,), dtype=jnp.float32) * 0.01

    # f32 path: strict check against the reference.
    loss, correct, denominator = contra_target_forward(memory_bank, w1, b1, w2, b2)
    loss = jax.block_until_ready(loss)
    ref = jax.block_until_ready(_reference_forward(memory_bank, w1, b1, w2, b2))
    assert jnp.allclose(loss, ref, rtol=1e-4, atol=1e-4), (loss, ref)
    assert correct == 0 and denominator == 0

    # bf16 fast path (bf16-native MXUs on v6e/v7x, half the z HBM traffic);
    # loose tolerance because 1/T = 14.3 amplifies bf16 rounding of sim.
    loss_bf16, _, _ = contra_target_forward(memory_bank, w1, b1, w2, b2,
                                            compute_dtype=jnp.bfloat16)
    loss_bf16 = jax.block_until_ready(loss_bf16)
    assert bool(jnp.isfinite(loss_bf16)), loss_bf16
    assert jnp.allclose(loss_bf16, ref, rtol=2e-1, atol=5e-2), (loss_bf16, ref)

    # Larger shape: exercises multiple row/col tiles, the VMEM-resident
    # contrast matrix with in-kernel column slicing, group masks straddling
    # tile boundaries, and padded rows/columns.
    B2, S2 = 10, 52
    mb2 = jax.random.normal(k_x2, (B2, S2, H), dtype=jnp.float32)
    loss2, _, _ = contra_target_forward(mb2, w1, b1, w2, b2)
    loss2 = jax.block_until_ready(loss2)
    ref2 = jax.block_until_ready(_reference_forward(mb2, w1, b1, w2, b2))
    assert jnp.allclose(loss2, ref2, rtol=1e-3, atol=1e-3), (loss2, ref2)

    print("KERNEL_OK")
</pallas_src>

<mosaic_0001>
module attributes {stable_mosaic.version = 11 : i64} {
  func.func @_mlp_normalize_kernel(%arg0: i32, %arg1: memref<16x32xf32, #tpu.memory_space<vmem>>, %arg2: memref<32x64xf32, #tpu.memory_space<vmem>>, %arg3: memref<1x64xf32, #tpu.memory_space<vmem>>, %arg4: memref<64x32xf32, #tpu.memory_space<vmem>>, %arg5: memref<1x32xf32, #tpu.memory_space<vmem>>, %arg6: memref<16x32xf32, #tpu.memory_space<vmem>>) attributes {dimension_semantics = [#tpu.dimension_semantics<parallel>], iteration_bounds = array<i64: 2>, scalar_prefetch = 0 : i64, scratch_operands = 0 : i64, tpu.core_type = #tpu.core_type<tc>, window_params = [{transform_indices = @transform_0, window_bounds = array<i64: 16, 32>}, {pipeline_mode = #tpu.pipeline_mode<synchronous>, transform_indices = @transform_1, window_bounds = array<i64: 32, 64>}, {pipeline_mode = #tpu.pipeline_mode<synchronous>, transform_indices = @transform_2, window_bounds = array<i64: 1, 64>}, {pipeline_mode = #tpu.pipeline_mode<synchronous>, transform_indices = @transform_3, window_bounds = array<i64: 64, 32>}, {pipeline_mode = #tpu.pipeline_mode<synchronous>, transform_indices = @transform_4, window_bounds = array<i64: 1, 32>}, {transform_indices = @transform_5, window_bounds = array<i64: 16, 32>}]} {
    %c0 = arith.constant 0 : index
    %c0_0 = arith.constant 0 : index
    %0 = vector.load %arg1[%c0, %c0_0] : memref<16x32xf32, #tpu.memory_space<vmem>>, vector<16x32xf32>
    %c0_1 = arith.constant 0 : index
    %c0_2 = arith.constant 0 : index
    %1 = vector.load %arg2[%c0_1, %c0_2] : memref<32x64xf32, #tpu.memory_space<vmem>>, vector<32x64xf32>
    %cst = arith.constant dense<0.000000e+00> : vector<16x64xf32>
    %2 = tpu.matmul %0, %1, %cst {dimension_numbers = #tpu.dot_dimension_numbers<[1], [0], [0], [1], [0, 0, 1, 1], [], []>} : vector<16x32xf32>, vector<32x64xf32>, vector<16x64xf32> -> vector<16x64xf32>
    %c0_3 = arith.constant 0 : index
    %c0_4 = arith.constant 0 : index
    %3 = vector.load %arg3[%c0_3, %c0_4] : memref<1x64xf32, #tpu.memory_space<vmem>>, vector<1x64xf32>
    %4 = vector.broadcast %3 : vector<1x64xf32> to vector<16x64xf32>
    %5 = arith.addf %2, %4 : vector<16x64xf32>
    %c0_5 = arith.constant 0 : index
    %c0_6 = arith.constant 0 : index
    %6 = vector.load %arg4[%c0_5, %c0_6] : memref<64x32xf32, #tpu.memory_space<vmem>>, vector<64x32xf32>
    %cst_7 = arith.constant dense<0.000000e+00> : vector<16x32xf32>
    %7 = tpu.matmul %5, %6, %cst_7 {dimension_numbers = #tpu.dot_dimension_numbers<[1], [0], [0], [1], [0, 0, 1, 1], [], []>} : vector<16x64xf32>, vector<64x32xf32>, vector<16x32xf32> -> vector<16x32xf32>
    %c0_8 = arith.constant 0 : index
    %c0_9 = arith.constant 0 : index
    %8 = vector.load %arg5[%c0_8, %c0_9] : memref<1x32xf32, #tpu.memory_space<vmem>>, vector<1x32xf32>
    %9 = vector.broadcast %8 : vector<1x32xf32> to vector<16x32xf32>
    %10 = arith.addf %7, %9 : vector<16x32xf32>
    %11 = arith.mulf %10, %10 : vector<16x32xf32>
    %cst_10 = arith.constant dense<0.000000e+00> : vector<16xf32>
    %12 = vector.multi_reduction <add>, %11, %cst_10 [1] : vector<16x32xf32> to vector<16xf32>
    %13 = vector.shape_cast %12 : vector<16xf32> to vector<16x1xf32>
    %cst_11 = arith.constant 1.000000e-30 : f32
    %14 = vector.broadcast %cst_11 : f32 to vector<16x1xf32>
    %15 = arith.maximumf %13, %14 : vector<16x1xf32>
    %16 = math.rsqrt %15 : vector<16x1xf32>
    %17 = vector.broadcast %16 : vector<16x1xf32> to vector<16x32xf32>
    %18 = arith.mulf %10, %17 : vector<16x32xf32>
    %c0_12 = arith.constant 0 : index
    %c0_13 = arith.constant 0 : index
    %19 = vector.load %arg6[%c0_12, %c0_13] : memref<16x32xf32, #tpu.memory_space<vmem>>, vector<16x32xf32>
    tpu.vector_store %arg6[%c0_12, %c0_13], %18 {strides = array<i32>} : memref<16x32xf32, #tpu.memory_space<vmem>>, vector<16x32xf32>,
    return
  }
  func.func @transform_0(%arg0: i32) -> (i32, i32) {
    %c0_i32 = arith.constant 0 : i32
    %c0_i32_0 = arith.constant 0 : i32
    return %arg0, %c0_i32 : i32, i32
  }
  func.func @transform_1(%arg0: i32) -> (i32, i32) {
    %c0_i32 = arith.constant 0 : i32
    %c0_i32_0 = arith.constant 0 : i32
    %c0_i32_1 = arith.constant 0 : i32
    return %c0_i32, %c0_i32_0 : i32, i32
  }
  func.func @transform_2(%arg0: i32) -> (i32, i32) {
    %c0_i32 = arith.constant 0 : i32
    %c0_i32_0 = arith.constant 0 : i32
    %c0_i32_1 = arith.constant 0 : i32
    return %c0_i32, %c0_i32_0 : i32, i32
  }
  func.func @transform_3(%arg0: i32) -> (i32, i32) {
    %c0_i32 = arith.constant 0 : i32
    %c0_i32_0 = arith.constant 0 : i32
    %c0_i32_1 = arith.constant 0 : i32
    return %c0_i32, %c0_i32_0 : i32, i32
  }
  func.func @transform_4(%arg0: i32) -> (i32, i32) {
    %c0_i32 = arith.constant 0 : i32
    %c0_i32_0 = arith.constant 0 : i32
    %c0_i32_1 = arith.constant 0 : i32
    return %c0_i32, %c0_i32_0 : i32, i32
  }
  func.func @transform_5(%arg0: i32) -> (i32, i32) {
    %c0_i32 = arith.constant 0 : i32
    %c0_i32_0 = arith.constant 0 : i32
    return %arg0, %c0_i32 : i32, i32
  }
}

</mosaic_0001>

<bundles_post_ra>
// kernel: tpu_custom_call.1
= control target key start
LH: loop header
LB: loop body
LE: loop exit
PB: predicated region body
PF: predicated region fallthrough
CT: control target
= control target key end

     0   :  { %10 = vsyncpa [#allocation3], 0  ;;  %s891_s0 = inlined_call_operand.vmem [shape: f32[32,32], index: 0, kind: input, shape index: {}]   ;;  %s892_s1 = inlined_call_operand.vmem [shape: f32[32,64], index: 1, kind: input, shape index: {}]   ;;  %s893_s2 = inlined_call_operand.vmem [shape: f32[1,64], index: 2, kind: input, shape index: {}]   ;;  %s894_s3 = inlined_call_operand.vmem [shape: f32[64,32], index: 3, kind: input, shape index: {}]   ;;  %s895_s4 = inlined_call_operand.vmem [shape: f32[1,32], index: 4, kind: input, shape index: {}]   ;;  %s896_s5 = inlined_call_operand.hbm [shape: f32[32,32], index: 5, kind: output, shape index: {}]  }
   0x1   :  { %12 = vsyncpa [#allocation3 + $0x1], 0  ;;  %s741_s18 = smov 0   ;;  %s743_s19 = smov 0  }
   0x2   :  { %s745_s20 = smov 0   ;;  %s747_s21 = smov 0  }
   0x3 LB: > { %s762_s22 = sadd.s32 4294967295, %s706_s21   ;;  %s510_s23 = sadd.s32 4294967294, %s706_s21   ;;  %s706_s21 = sphi %s747_s21, %s902_s21   ;;  %s702_s20 = sphi %s745_s20, %s901_s20   ;;  %s698_s19 = sphi %s743_s19, %s900_s19   ;;  %s694_s18 = sphi %s741_s18, %s899_s18  }
   0x4   : > { %s766_s24 = sadd.s32 1, %s706_s21   ;;  %s135_s25 = sadd.s32 1, %s702_s20 }
   0x5   : > { %s132_s26 = ssub.s32 %s706_s21, %s766_s24  ;;  %p145_p0 = scmp.ne.s32.totalorder %s702_s20, %s698_s19 }
   0x6   : > { %p133_p1 = scmp.eq.s32.totalorder %s132_s26, 0  ;;  %p146_p2 = scmp.eq.s32.totalorder %s762_s22, 1 }
   0x7   : > { %p151_p3 = scmp.ne.s32.totalorder %s698_s19, %s694_s18  ;;  %p152_p4 = scmp.eq.s32.totalorder %s510_s23, 1 }
   0x8   : > { %s777_s27 = scalar_select %p133_p1, %s702_s20, %s135_s25  }
   0x9   : > { %p779_p5 = por %p146_p2, %p145_p0  ;;  %p783_p6 = por %p152_p4, %p151_p3 }
   0xa   : > { %p513_p7 = scmp.ge.s32.totalorder %s706_s21, 1  ;;  %p191_p8 = scmp.lt.s32.totalorder %s706_s21, 3 }
   0xc   : > { %p192_p9 = pnand %p513_p7, %p191_p8 }
   0xd   : > { %v228_v0 = vld [vmem:[%s892_s1] sm:$0xff] (!%p192_p9)  ;;  %v229_v1 = vld [vmem:[%s892_s1 + $0x8] sm:$0xff] (!%p192_p9)  ;;  %v230_v2 = vld [vmem:[%s892_s1 + $0x10] sm:$0xff] (!%p192_p9)  ;;  %s515_s11 = sshll.u32 (!%p192_p9), %s762_s22, 1  ;;  %vm239_vm0 = vcmask (!%p192_p9), 261120   ;;  %vm336_vm1 = vcmask (!%p192_p9), 523264  }
   0xe   : > { %195 = sbr.rel (%p192_p9) target bundleno = 636 (0x27c), region = 40  ;;  %v575_v3 = vpack.c.bf16 (!%p192_p9), %v229_v1, %v228_v0  ;;  %v231_v4 = vld [vmem:[%s892_s1 + $0x18] sm:$0xff] (!%p192_p9)  ;;  %p220_p10 = scmp.lt.s32.totalorder (!%p192_p9), %s515_s11, 3  ;;  %v321_v5 = vld [vmem:[%s894_s3] sm:$0xff] (!%p192_p9)  ;;  %v322_v6 = vld [vmem:[%s894_s3 + $0x8] sm:$0xff] (!%p192_p9) }
   0xf   : > { %v579_v7 = vpack.c.bf16 (!%p192_p9), %v231_v4, %v230_v2  ;;  %v583_v8 = vpack.c.bf16 (!%p192_p9), %v322_v6, %v321_v5  ;;  %v323_v9 = vld [vmem:[%s894_s3 + $0x10] sm:$0xff] (!%p192_p9)  ;;  %v324_v10 = vld [vmem:[%s894_s3 + $0x18] sm:$0xff] (!%p192_p9)  ;;  %v325_v12 = vld [vmem:[%s894_s3 + $0x20] sm:$0xff] (!%p192_p9)  ;;  %s216_s6 = sand.u32 (!%p192_p9), 1, %s698_s19   ;;  %s528_s8 = sshll.u32 (!%p192_p9), %s762_s22, 8 }
  0x10   : > { %576 = vmatprep.subr.bf16.mxu0 (!%p192_p9), %v575_v3  ;;  %v587_v11 = vpack.c.bf16 (!%p192_p9), %v324_v10, %v323_v9  ;;  %v326_v13 = vld [vmem:[%s894_s3 + $0x28] sm:$0xff] (!%p192_p9)  ;;  %v327_v17 = vld [vmem:[%s894_s3 + $0x30] sm:$0xff] (!%p192_p9)  ;;  %v328_v18 = vld [vmem:[%s894_s3 + $0x38] sm:$0xff] (!%p192_p9)  ;;  %s514_s7 = sshll.u32 (!%p192_p9), %s216_s6, 4  ;;  %s850_s15 = scalar_lea.sflag (!%p192_p9), [#allocation3], %s216_s6 }
  0x11   : > { %578 = vmatpush3.bf16.msra.mxu0 (!%p192_p9), %v575_v3  ;;  %584 = vmatprep.subr.bf16.mxu1 (!%p192_p9), %v583_v8  ;;  %v591_v14 = vpack.c.bf16 (!%p192_p9), %v326_v13, %v325_v12  ;;  %v595_v19 = vpack.c.bf16 (!%p192_p9), %v328_v18, %v327_v17  ;;  %v517_v20 = vld [vmem:[%s893_s2] ss:$0 sm:$0xff] (!%p192_p9)  ;;  %s218_s9 = scalar_lea.vmem (!%p192_p9), [#allocation2], %s514_s7 }
  0x12   : > { %580 = vmatprep.subr.bf16.mxu0 (!%p192_p9), %v579_v7  ;;  %586 = vmatpush3.bf16.msra.mxu1 (!%p192_p9), %v583_v8  ;;  %v520_v25 = vld [vmem:[%s895_s4] ss:$0 sm:$0xff] (!%p192_p9) }
  0x13   : > { %588 = vmatprep.subr.bf16.mxu1 (!%p192_p9), %v587_v11 }
  0x15   : > { %s904_s11 = smov (!%p220_p10, %s515_s11), 3  ;;  %582 = vmatpush3.bf16.msra.mxu0 %v579_v7 }
  0x16   : > { %s516_s10 = sshll.u32 %s904_s11, 3  ;;  %590 = vmatpush3.bf16.msra.mxu1 %v587_v11  ;;  %s708_s11 = smov [#allocation2]  }
  0x17   : > { %s223_s14 = scalar_lea.vmem %s891_s0, %s516_s10  ;;  %592 = vmatprep.subr.bf16.mxu1 %v591_v14  ;;  %s448_s10 = sshll.u32 %s218_s9, 4  ;;  %s847_s10 = int_to_ptr.vmem [resolvable:$true] %s448_s10 }
  0x18   : > { %v226_v15 = vld [vmem:[%s223_s14] sm:$0xff]  ;;  %v227_v16 = vld [vmem:[%s223_s14 + $0x8] sm:$0xff]  ;;  %s845_s14 = scalar_lea.hbm %s896_s5, %s528_s8  ;;  %s644_s22 = scalar_lea.vmem %s847_s10, 256 }
  0x19   : > { %553 = vmatprep.mubr.msk.f32.mxu0 %vm239_vm0, %v226_v15  ;;  %p645_p11 = scmp.ne.s32.totalorder %s847_s10, %s644_s22  ;;  %s648_s16 = sshll.u32 %s708_s11, 4  ;;  %s649_s16 = int_to_ptr.vmem [resolvable:$false] %s648_s16 }
  0x1a   : > { %554 = vmatmul.mubr.msk.f32.vlgmr.msra.gmra.mrb[0].mxu0 %vm239_vm0, %v227_v16  ;;  %594 = vmatpush3.bf16.msra.mxu1 %v591_v14  ;;  %s650_s17 = scalar_lea.vmem %s649_s16, 512  ;;  %p651_p0 = scmp.lt.s32.totalorder %s847_s10, %s649_s16 }
  0x1b   : > { %596 = vmatprep.subr.bf16.mxu1 %v595_v19  ;;  %p646_p12 = pnand %p645_p11, %p779_p5  ;;  %p652_p1 = scmp.lt.s32.totalorder %s650_s17, %s644_s22 }
  0x1d   : > { %p647_p13 = pneg %p646_p12  ;;  %p653_p2 = por %p652_p1, %p651_p0 }
  0x1e   : > { %598 = vmatpush3.bf16.msra.mxu1 %v595_v19 }
  0x1f   : > { %p654_p3 = pnand %p653_p2, %p647_p13 }
  0xed   : > { %v555_v21 = vpop.f32.mrb[0].mxu0 }
  0xee   : > { %v312_v22 = vpop.f32.mrb[1].mxu0  ;;  %v318_v24 = vadd.f32 %v555_v21, %v517_v20 }
  0xef   : > { %v313_v23 = vadd.f32 %v517_v20, %v312_v22 }
  0xf1   : > { %572 = vmatprep.mubr.msk.f32.mxu1 %vm336_vm1, %v313_v23 }
  0xf2   : > { %573 = vmatmul.mubr.msk.f32.vlgmr.msra.gmra.mrb[0].mxu1 %vm336_vm1, %v318_v24 }
 0x1c5   : > { %v574_v26 = vpop.f32.mrb[0].mxu1 }
 0x1c6   : > { %v409_v27 = vpop.f32.mrb[1].mxu1  ;;  %v415_v28 = vadd.f32 %v574_v26, %v520_v25 }
 0x1c7   : > { %v410_v29 = vadd.f32 %v520_v25, %v409_v27 }
 0x1c8   : > { %v419_v32 = vmul.f32 %v415_v28, %v415_v28 }
 0x1c9   : > { %v418_v30 = vmul.f32 %v410_v29, %v410_v29 }
 0x1ca   : > { %v423_v33 = vsel %vm239_vm0, %v419_v32, 0.0 }
 0x1cb   : > { %v420_v31 = vsel %vm239_vm0, %v418_v30, 0.0 }
 0x1cc   : > { %421 = vadd.xlane.f32.xlu0 %v420_v31 }
 0x1d0   : > { %424 = vadd.xlane.f32.xlu0 %v423_v33 }
 0x259   : > { %v422_v34 = vpop.xlane.xlu0 %421 }
 0x25a   : > { %v426_v35 = vmax.f32 %v422_v34, 1e-30 }
 0x25c   : > { %640 = vrsqrt.f32 %v426_v35 }
 0x25d   : > { %v425_v36 = vpop.xlane.xlu0 %424 }
 0x25e   : > { %v427_v37 = vmax.f32 %v425_v36, 1e-30 }
 0x260   : > { %642 = vrsqrt.f32 %v427_v37 }
 0x266   : > { %v641_v38 = vpop.eup %640 }
 0x267   : > { %v430_v39 = vmul.f32 %v641_v38, %v410_v29 }
 0x269   : > { %432 = vst.msk [vmem:[%s218_s9] sm:$0xff] %vm239_vm0, %v430_v39 }
 0x26a   : > { %v643_v40 = vpop.eup %642 }
 0x26b   : > { %v431_v41 = vmul.f32 %v643_v40, %v415_v28 }
 0x26d   : > { %433 = vst.msk [vmem:[%s218_s9 + $0x8] sm:$0xff] %vm239_vm0, %v431_v41 }
 0x26e   : > { %657 = shalt.err (!%p654_p3)
}
 0x26f   : > { %s658_s23 = scalar_lea.hbm %s845_s14, 256  ;;  %s662_s30 = scalar_lea.hbm %s896_s5, 512 }
 0x270   : > { %p659_p4 = scmp.ne.s32.totalorder %s845_s14, %s658_s23  ;;  %p663_p9 = scmp.lt.u32.totalorder %s845_s14, %s896_s5 }
 0x271   : > { %p664_p10 = scmp.lt.u32.totalorder %s662_s30, %s658_s23  ;;  %p666_p12 = scmp.lt.u32.totalorder %s658_s23, %s845_s14 }
 0x272   : > { %p660_p7 = pnand %p659_p4, %p779_p5 }
 0x273   : > { %p665_p11 = por %p664_p10, %p663_p9 }
 0x274   : > { %p661_p8 = pneg %p660_p7 }
 0x275   : > { %p667_p13 = por %p666_p12, %p665_p11 }
 0x277   : > { %p668_p0 = pnand %p667_p13, %p661_p8 }
 0x279   : > { %671 = shalt.err (!%p668_p0)
}
 0x27a   : > { %s709_s8 = smov 128   ;;  %s710_s9 = smov 8  }
 0x27b   : > { %599 = dma.vmem_to_hbm [thread:$0]  (%p779_p5), %s847_s10, 256, %s845_s14, %s850_s15, %s709_s8, %s709_s8, %s710_s9  }
 0x27c PF: > { %p605_p1 = scmp.ge.s32.totalorder %s706_s21, 2  ;;  %s463_s12 = sand.u32 1, %s694_s18  }
 0x27d   : > { %s464_s13 = scalar_lea.sflag [#allocation3], %s463_s12 }
 0x27e   : > { %p602_p2 = pnand %p605_p1, %p783_p6 }
 0x280   : > { %689 = dma.done.wait (!%p602_p2), %s464_s13, 256  }
 0x281   : > { %691 = vsyncadd (!%p602_p2), %s464_s13, 4294967040  ;;  %p15_p3 = scmp.ge.s32.totalorder %s766_s24, 4   ;;  %s899_s18 = smov %s698_s19 }
 0x282   : > { %s900_s19 = smov %s702_s20  ;;  %s901_s20 = smov %s777_s27 }
 0x283   : > { %s902_s21 = smov %s766_s24  ;;  %17 = sbr.rel (!%p15_p3) target bundleno = 3 (0x3), region = 75 }
 0x28a   :  { %469 = vsyncpa [#allocation3], 1 }
 0x28b   :  { %471 = vsyncpa [#allocation3 + $0x1], 1 }

</bundles_post_ra>
